<compile_context>
chip_gen: v6e
topology: v6e:2x2x1
jax: 0.10.0
libtpu: 0.0.40
codegen_flags: <defaults>
</compile_context>

<pallas_src>
import functools
import numpy as np
import jax
import jax.numpy as jnp
from jax import lax
from jax.experimental import pallas as pl
from jax.experimental.pallas import tpu as pltpu

LEAKY_SLOPE = 0.2
_VMEM_LIMIT = 32 * 1024 * 1024


# ----------------------------------------------------------------------------
# Conv1d kernel: grouped, stride-1, im2col -> one MXU matmul per group
# ----------------------------------------------------------------------------
def _conv1d_kernel(x_lo_ref, x_hi_ref, w_ref, b_ref, o_ref, xbuf_ref, col_ref,
                   *, K, cin_pg, out_pg, groups, leaky):
    # x_lo/x_hi: (1, C_in, TT) bf16  — current time tile and its right neighbour
    # w_ref:     (groups, out_pg, cin_pg*K) bf16 — per-group im2col'd weights
    # b_ref:     (C_out, 1) f32
    # o_ref:     (1, C_out, TT) f32
    # xbuf_ref:  VMEM (C_in, 2*TT) bf16 — stitched tile + right halo
    # col_ref:   VMEM (cin_pg*K, TT) bf16 — im2col matrix (reused per group)
    TT = o_ref.shape[2]
    xbuf_ref[:, :TT] = x_lo_ref[0]
    xbuf_ref[:, TT:] = x_hi_ref[0]
    for g in range(groups):                       # static unroll: block-diagonal groups
        base = g * cin_pg
        for k in range(K):                        # rows of im2col ordered (tap k, chan c)
            col_ref[k * cin_pg:(k + 1) * cin_pg, :] = \
                xbuf_ref[base:base + cin_pg, k:k + TT]
        acc = jnp.dot(w_ref[g], col_ref[...],
                      preferred_element_type=jnp.float32)     # single MXU matmul per group
        acc = acc + b_ref[g * out_pg:(g + 1) * out_pg]        # f32 bias
        if leaky:
            acc = jnp.where(acc > 0, acc, LEAKY_SLOPE * acc)  # f32 epilogue
        o_ref[0, g * out_pg:(g + 1) * out_pg, :] = acc.astype(o_ref.dtype)


def conv1d_pallas(h, w, b, cfg, *, time_tile=128):
    """Stride-1 grouped Conv1d + bias (+ optional LeakyReLU(0.2)).

    h:   (B, C_in, T) f32 activations.
    w:   (C_out, C_in/groups, K) f32 (torch layout) — NOT expanded to dense.
    b:   (C_out,) f32.
    cfg: dict with pad / pad_mode / groups / stride / leaky.
    """
    B, C_in, T = h.shape
    C_out, cin_pg, K = w.shape
    groups = cfg["groups"]
    out_pg = C_out // groups
    R = cin_pg * K
    pad = cfg["pad"]
    # TODO(synk): strided conv path (downsampling_factor > 1) not implemented;
    # the demo config uses downsampling_factor=1 so every conv is stride-1.
    assert cfg["stride"] == 1
    T_out = T + 2 * pad - (K - 1)
    assert T_out % 128 == 0, "demo tiling assumes T_out is a multiple of 128"
    TT = time_tile
    while T_out % TT:
        TT -= 128
    num_t = T_out // TT

    mode = "reflect" if cfg["pad_mode"] == "reflect" else "constant"
    hp = jnp.pad(h, ((0, 0), (0, 0), (pad, pad)), mode=mode)
    extra = (num_t + 1) * TT - hp.shape[2]        # room so block index (t+1) is in bounds
    hp = jnp.pad(hp, ((0, 0), (0, 0), (0, extra))).astype(jnp.bfloat16)

    # (C_out, cin_pg, K) -> (groups, out_pg, K*cin_pg); column index = k*cin_pg + c
    w3 = (w.reshape(groups, out_pg, cin_pg, K)
            .transpose(0, 1, 3, 2)
            .reshape(groups, out_pg, R)
            .astype(jnp.bfloat16))
    b2 = b.reshape(C_out, 1).astype(jnp.float32)

    kernel = functools.partial(_conv1d_kernel, K=K, cin_pg=cin_pg,
                               out_pg=out_pg, groups=groups, leaky=cfg["leaky"])
    return pl.pallas_call(
        kernel,
        out_shape=jax.ShapeDtypeStruct((B, C_out, T_out), jnp.float32),
        grid=(B, num_t),
        in_specs=[
            pl.BlockSpec((1, C_in, TT), lambda bi, ti: (bi, 0, ti)),      # current tile
            pl.BlockSpec((1, C_in, TT), lambda bi, ti: (bi, 0, ti + 1)),  # right halo tile
            pl.BlockSpec((groups, out_pg, R), lambda bi, ti: (0, 0, 0)),  # resident weights
            pl.BlockSpec((C_out, 1), lambda bi, ti: (0, 0)),              # resident bias
        ],
        out_specs=pl.BlockSpec((1, C_out, TT), lambda bi, ti: (bi, 0, ti)),
        scratch_shapes=[
            pltpu.VMEM((C_in, 2 * TT), jnp.bfloat16),   # stitched tile + halo
            pltpu.VMEM((R, TT), jnp.bfloat16),          # im2col matrix
        ],
        compiler_params=pltpu.CompilerParams(
            dimension_semantics=("parallel", "parallel"),
            vmem_limit_bytes=_VMEM_LIMIT),
    )(hp, hp, w3, b2)


# ----------------------------------------------------------------------------
# AvgPool1d(4, stride=2, padding=1, count_include_pad=False)
# TODO(synk): could be fused into the next scale's first conv (or use in-kernel
# strided reads) to cut its HBM traffic further.
# ----------------------------------------------------------------------------
def _avgpool_kernel(xe_ref, xo_ref, inv_ref, o_ref):
    # xe/xo: (1, C, N+1) even/odd padded samples; inv: (1, N); o: (1, C, N)
    N = o_ref.shape[2]
    xe = xe_ref[0]
    xo = xo_ref[0]
    s = xe[:, :N] + xo[:, :N] + xe[:, 1:N + 1] + xo[:, 1:N + 1]
    o_ref[0] = s * inv_ref[...]


def avgpool1d_pallas(x):
    """nn.AvgPool1d(4, stride=2, padding=1, count_include_pad=False). x: (B,C,T), T even."""
    B, C, T = x.shape
    assert T % 2 == 0
    N = T // 2
    xp = jnp.pad(x, ((0, 0), (0, 0), (1, 1)))      # zero pad both ends
    xe = xp[:, :, 0::2]                             # (B, C, N+1)
    xo = xp[:, :, 1::2]                             # (B, C, N+1)
    counts = np.full((1, N), 4.0, np.float32)
    counts[0, 0] = 3.0                              # edge windows see only 3 real samples
    counts[0, N - 1] = 3.0
    inv = jnp.asarray(1.0 / counts)
    return pl.pallas_call(
        _avgpool_kernel,
        out_shape=jax.ShapeDtypeStruct((B, C, N), jnp.float32),
        grid=(B,),
        in_specs=[
            pl.BlockSpec((1, C, N + 1), lambda i: (i, 0, 0)),
            pl.BlockSpec((1, C, N + 1), lambda i: (i, 0, 0)),
            pl.BlockSpec((1, N), lambda i: (0, 0)),
        ],
        out_specs=pl.BlockSpec((1, C, N), lambda i: (i, 0, 0)),
        compiler_params=pltpu.CompilerParams(
            dimension_semantics=("parallel",),
            vmem_limit_bytes=_VMEM_LIMIT),
    )(xe, xo, inv)


# ----------------------------------------------------------------------------
# Model definition (mirrors the PyTorch __init__ exactly)
# ----------------------------------------------------------------------------
def nlayer_disc_configs(ndf, n_layers, downsampling_factor):
    cfgs = [dict(cin=1, cout=ndf, k=15, stride=1, pad=7, pad_mode="reflect",
                 groups=1, leaky=True)]
    nf = ndf
    stride = downsampling_factor
    for _ in range(1, n_layers + 1):
        nf_prev = nf
        nf = min(nf * stride, 1024)
        cfgs.append(dict(cin=nf_prev, cout=nf, k=stride * 10 + 1, stride=stride,
                         pad=stride * 5, pad_mode="zeros", groups=nf_prev // 4,
                         leaky=True))
    nf = min(nf * 2, 1024)
    # NOTE: uses nf_prev exactly as in the reference code.
    cfgs.append(dict(cin=nf_prev, cout=nf, k=5, stride=1, pad=2, pad_mode="zeros",
                     groups=1, leaky=True))
    cfgs.append(dict(cin=nf, cout=1, k=3, stride=1, pad=1, pad_mode="zeros",
                     groups=1, leaky=False))
    return cfgs


def init_params(key, num_D, ndf, n_layers, downsampling_factor):
    cfgs = nlayer_disc_configs(ndf, n_layers, downsampling_factor)
    params = []
    for _ in range(num_D):
        layers = []
        for cfg in cfgs:
            key, kw, kb = jax.random.split(key, 3)
            cin_pg = cfg["cin"] // cfg["groups"]
            w = 0.02 * jax.random.normal(kw, (cfg["cout"], cin_pg, cfg["k"]),
                                         jnp.float32)
            bound = 1.0 / np.sqrt(cin_pg * cfg["k"])
            b = jax.random.uniform(kb, (cfg["cout"],), jnp.float32, -bound, bound)
            layers.append(dict(cfg=cfg, w=w, b=b))
        params.append(layers)
    return params


def discriminator_forward(params, x):
    results = []
    num_D = len(params)
    for d, disc in enumerate(params):
        h = x
        feats = []
        for lp in disc:
            h = conv1d_pallas(h, lp["w"], lp["b"], lp["cfg"])
            feats.append(h)
        results.append(feats)
        if d < num_D - 1:
            x = avgpool1d_pallas(x)
    return results


# ----------------------------------------------------------------------------
# Pure-JAX reference (for self-check)
# ----------------------------------------------------------------------------
def _conv1d_ref(x, w, b, cfg):
    mode = "reflect" if cfg["pad_mode"] == "reflect" else "constant"
    xp = jnp.pad(x, ((0, 0), (0, 0), (cfg["pad"], cfg["pad"])), mode=mode)
    y = lax.conv_general_dilated(
        xp, w, window_strides=(cfg["stride"],), padding=[(0, 0)],
        dimension_numbers=("NCH", "OIH", "NCH"),
        feature_group_count=cfg["groups"],
        precision=lax.Precision.HIGHEST)
    y = y + b[None, :, None]
    if cfg["leaky"]:
        y = jnp.where(y > 0, y, LEAKY_SLOPE * y)
    return y


def _avgpool1d_ref(x):
    B, C, T = x.shape
    N = T // 2
    xp = jnp.pad(x, ((0, 0), (0, 0), (1, 1)))
    s = sum(xp[:, :, j:j + 2 * N:2] for j in range(4))
    counts = np.full((N,), 4.0, np.float32)
    counts[0] = 3.0
    counts[-1] = 3.0
    return s / counts[None, None, :]


def discriminator_forward_ref(params, x):
    results = []
    num_D = len(params)
    for d, disc in enumerate(params):
        h = x
        feats = []
        for lp in disc:
            feats.append(_conv1d_ref(h, lp["w"], lp["b"], lp["cfg"]))
            h = feats[-1]
        results.append(feats)
        if d < num_D - 1:
            x = _avgpool1d_ref(x)
    return results


# ----------------------------------------------------------------------------
if __name__ == "__main__":
    num_D, ndf, n_layers, downsampling_factor = 2, 8, 2, 1
    B, T = 2, 256            # T=256 exercises the 2-tile time grid + halo path

    key = jax.random.PRNGKey(0)
    key, kx = jax.random.split(key)
    x = jax.random.normal(kx, (B, 1, T), jnp.float32)
    params = init_params(key, num_D, ndf, n_layers, downsampling_factor)

    out = discriminator_forward(params, x)
    out = jax.block_until_ready(out)

    ref = discriminator_forward_ref(params, x)
    for d in range(num_D):
        for li, (a, r) in enumerate(zip(out[d], ref[d])):
            assert a.shape == r.shape, (d, li, a.shape, r.shape)
            err = float(jnp.max(jnp.abs(a - r)))
            tol = 1e-5 + 5e-2 * float(jnp.max(jnp.abs(r)))   # bf16 inputs, f32 accumulation
            assert err <= tol, f"disc {d} layer {li}: err={err} tol={tol}"

    print("KERNEL_OK")
</pallas_src>

<mosaic_0001>
module attributes {stable_mosaic.version = 11 : i64} {
  func.func @_conv1d_kernel(%arg0: i32, %arg1: i32, %arg2: memref<1x1x128xbf16, #tpu.memory_space<vmem>>, %arg3: memref<1x1x128xbf16, #tpu.memory_space<vmem>>, %arg4: memref<1x8x15xbf16, #tpu.memory_space<vmem>>, %arg5: memref<8x1xf32, #tpu.memory_space<vmem>>, %arg6: memref<1x8x128xf32, #tpu.memory_space<vmem>>, %arg7: memref<1x256xbf16, #tpu.memory_space<vmem>>, %arg8: memref<15x128xbf16, #tpu.memory_space<vmem>>) attributes {dimension_semantics = [#tpu.dimension_semantics<parallel>, #tpu.dimension_semantics<parallel>], iteration_bounds = array<i64: 2, 2>, scalar_prefetch = 0 : i64, scratch_operands = 2 : i64, tpu.core_type = #tpu.core_type<tc>, window_params = [{transform_indices = @transform_0, window_bounds = array<i64: 1, 1, 128>}, {transform_indices = @transform_1, window_bounds = array<i64: 1, 1, 128>}, {pipeline_mode = #tpu.pipeline_mode<synchronous>, transform_indices = @transform_2, window_bounds = array<i64: 1, 8, 15>}, {pipeline_mode = #tpu.pipeline_mode<synchronous>, transform_indices = @transform_3, window_bounds = array<i64: 8, 1>}, {transform_indices = @transform_4, window_bounds = array<i64: 1, 8, 128>}]} {
    %c0 = arith.constant 0 : index
    %c0_0 = arith.constant 0 : index
    %c0_1 = arith.constant 0 : index
    %0 = vector.load %arg2[%c0, %c0_0, %c0_1] : memref<1x1x128xbf16, #tpu.memory_space<vmem>>, vector<1x1x128xbf16>
    %1 = vector.shape_cast %0 : vector<1x1x128xbf16> to vector<1x128xbf16>
    %c0_2 = arith.constant 0 : index
    %c0_3 = arith.constant 0 : index
    %2 = vector.load %arg7[%c0_2, %c0_3] : memref<1x256xbf16, #tpu.memory_space<vmem>>, vector<1x128xbf16>
    tpu.vector_store %arg7[%c0_2, %c0_3], %1 {strides = array<i32>} : memref<1x256xbf16, #tpu.memory_space<vmem>>, vector<1x128xbf16>,
    %c0_4 = arith.constant 0 : index
    %c0_5 = arith.constant 0 : index
    %c0_6 = arith.constant 0 : index
    %3 = vector.load %arg3[%c0_4, %c0_5, %c0_6] : memref<1x1x128xbf16, #tpu.memory_space<vmem>>, vector<1x1x128xbf16>
    %4 = vector.shape_cast %3 : vector<1x1x128xbf16> to vector<1x128xbf16>
    %c0_7 = arith.constant 0 : index
    %c128 = arith.constant 128 : index
    %5 = vector.load %arg7[%c0_7, %c128] : memref<1x256xbf16, #tpu.memory_space<vmem>>, vector<1x128xbf16>
    tpu.vector_store %arg7[%c0_7, %c128], %4 {strides = array<i32>} : memref<1x256xbf16, #tpu.memory_space<vmem>>, vector<1x128xbf16>,
    %c0_8 = arith.constant 0 : index
    %c0_9 = arith.constant 0 : index
    %6 = vector.load %arg7[%c0_8, %c0_9] : memref<1x256xbf16, #tpu.memory_space<vmem>>, vector<1x128xbf16>
    %c0_10 = arith.constant 0 : index
    %c0_11 = arith.constant 0 : index
    %7 = vector.load %arg8[%c0_10, %c0_11] : memref<15x128xbf16, #tpu.memory_space<vmem>>, vector<1x128xbf16>
    tpu.vector_store %arg8[%c0_10, %c0_11], %6 {strides = array<i32>} : memref<15x128xbf16, #tpu.memory_space<vmem>>, vector<1x128xbf16>,
    %c0_12 = arith.constant 0 : index
    %c1 = arith.constant 1 : index
    %8 = vector.load %arg7[%c0_12, %c1] : memref<1x256xbf16, #tpu.memory_space<vmem>>, vector<1x128xbf16>
    %c1_13 = arith.constant 1 : index
    %c0_14 = arith.constant 0 : index
    %9 = vector.load %arg8[%c1_13, %c0_14] : memref<15x128xbf16, #tpu.memory_space<vmem>>, vector<1x128xbf16>
    tpu.vector_store %arg8[%c1_13, %c0_14], %8 {strides = array<i32>} : memref<15x128xbf16, #tpu.memory_space<vmem>>, vector<1x128xbf16>,
    %c0_15 = arith.constant 0 : index
    %c2 = arith.constant 2 : index
    %10 = vector.load %arg7[%c0_15, %c2] : memref<1x256xbf16, #tpu.memory_space<vmem>>, vector<1x128xbf16>
    %c2_16 = arith.constant 2 : index
    %c0_17 = arith.constant 0 : index
    %11 = vector.load %arg8[%c2_16, %c0_17] : memref<15x128xbf16, #tpu.memory_space<vmem>>, vector<1x128xbf16>
    tpu.vector_store %arg8[%c2_16, %c0_17], %10 {strides = array<i32>} : memref<15x128xbf16, #tpu.memory_space<vmem>>, vector<1x128xbf16>,
    %c0_18 = arith.constant 0 : index
    %c3 = arith.constant 3 : index
    %12 = vector.load %arg7[%c0_18, %c3] : memref<1x256xbf16, #tpu.memory_space<vmem>>, vector<1x128xbf16>
    %c3_19 = arith.constant 3 : index
    %c0_20 = arith.constant 0 : index
    %13 = vector.load %arg8[%c3_19, %c0_20] : memref<15x128xbf16, #tpu.memory_space<vmem>>, vector<1x128xbf16>
    tpu.vector_store %arg8[%c3_19, %c0_20], %12 {strides = array<i32>} : memref<15x128xbf16, #tpu.memory_space<vmem>>, vector<1x128xbf16>,
    %c0_21 = arith.constant 0 : index
    %c4 = arith.constant 4 : index
    %14 = vector.load %arg7[%c0_21, %c4] : memref<1x256xbf16, #tpu.memory_space<vmem>>, vector<1x128xbf16>
    %c4_22 = arith.constant 4 : index
    %c0_23 = arith.constant 0 : index
    %15 = vector.load %arg8[%c4_22, %c0_23] : memref<15x128xbf16, #tpu.memory_space<vmem>>, vector<1x128xbf16>
    tpu.vector_store %arg8[%c4_22, %c0_23], %14 {strides = array<i32>} : memref<15x128xbf16, #tpu.memory_space<vmem>>, vector<1x128xbf16>,
    %c0_24 = arith.constant 0 : index
    %c5 = arith.constant 5 : index
    %16 = vector.load %arg7[%c0_24, %c5] : memref<1x256xbf16, #tpu.memory_space<vmem>>, vector<1x128xbf16>
    %c5_25 = arith.constant 5 : index
    %c0_26 = arith.constant 0 : index
    %17 = vector.load %arg8[%c5_25, %c0_26] : memref<15x128xbf16, #tpu.memory_space<vmem>>, vector<1x128xbf16>
    tpu.vector_store %arg8[%c5_25, %c0_26], %16 {strides = array<i32>} : memref<15x128xbf16, #tpu.memory_space<vmem>>, vector<1x128xbf16>,
    %c0_27 = arith.constant 0 : index
    %c6 = arith.constant 6 : index
    %18 = vector.load %arg7[%c0_27, %c6] : memref<1x256xbf16, #tpu.memory_space<vmem>>, vector<1x128xbf16>
    %c6_28 = arith.constant 6 : index
    %c0_29 = arith.constant 0 : index
    %19 = vector.load %arg8[%c6_28, %c0_29] : memref<15x128xbf16, #tpu.memory_space<vmem>>, vector<1x128xbf16>
    tpu.vector_store %arg8[%c6_28, %c0_29], %18 {strides = array<i32>} : memref<15x128xbf16, #tpu.memory_space<vmem>>, vector<1x128xbf16>,
    %c0_30 = arith.constant 0 : index
    %c7 = arith.constant 7 : index
    %20 = vector.load %arg7[%c0_30, %c7] : memref<1x256xbf16, #tpu.memory_space<vmem>>, vector<1x128xbf16>
    %c7_31 = arith.constant 7 : index
    %c0_32 = arith.constant 0 : index
    %21 = vector.load %arg8[%c7_31, %c0_32] : memref<15x128xbf16, #tpu.memory_space<vmem>>, vector<1x128xbf16>
    tpu.vector_store %arg8[%c7_31, %c0_32], %20 {strides = array<i32>} : memref<15x128xbf16, #tpu.memory_space<vmem>>, vector<1x128xbf16>,
    %c0_33 = arith.constant 0 : index
    %c8 = arith.constant 8 : index
    %22 = vector.load %arg7[%c0_33, %c8] : memref<1x256xbf16, #tpu.memory_space<vmem>>, vector<1x128xbf16>
    %c8_34 = arith.constant 8 : index
    %c0_35 = arith.constant 0 : index
    %23 = vector.load %arg8[%c8_34, %c0_35] : memref<15x128xbf16, #tpu.memory_space<vmem>>, vector<1x128xbf16>
    tpu.vector_store %arg8[%c8_34, %c0_35], %22 {strides = array<i32>} : memref<15x128xbf16, #tpu.memory_space<vmem>>, vector<1x128xbf16>,
    %c0_36 = arith.constant 0 : index
    %c9 = arith.constant 9 : index
    %24 = vector.load %arg7[%c0_36, %c9] : memref<1x256xbf16, #tpu.memory_space<vmem>>, vector<1x128xbf16>
    %c9_37 = arith.constant 9 : index
    %c0_38 = arith.constant 0 : index
    %25 = vector.load %arg8[%c9_37, %c0_38] : memref<15x128xbf16, #tpu.memory_space<vmem>>, vector<1x128xbf16>
    tpu.vector_store %arg8[%c9_37, %c0_38], %24 {strides = array<i32>} : memref<15x128xbf16, #tpu.memory_space<vmem>>, vector<1x128xbf16>,
    %c0_39 = arith.constant 0 : index
    %c10 = arith.constant 10 : index
    %26 = vector.load %arg7[%c0_39, %c10] : memref<1x256xbf16, #tpu.memory_space<vmem>>, vector<1x128xbf16>
    %c10_40 = arith.constant 10 : index
    %c0_41 = arith.constant 0 : index
    %27 = vector.load %arg8[%c10_40, %c0_41] : memref<15x128xbf16, #tpu.memory_space<vmem>>, vector<1x128xbf16>
    tpu.vector_store %arg8[%c10_40, %c0_41], %26 {strides = array<i32>} : memref<15x128xbf16, #tpu.memory_space<vmem>>, vector<1x128xbf16>,
    %c0_42 = arith.constant 0 : index
    %c11 = arith.constant 11 : index
    %28 = vector.load %arg7[%c0_42, %c11] : memref<1x256xbf16, #tpu.memory_space<vmem>>, vector<1x128xbf16>
    %c11_43 = arith.constant 11 : index
    %c0_44 = arith.constant 0 : index
    %29 = vector.load %arg8[%c11_43, %c0_44] : memref<15x128xbf16, #tpu.memory_space<vmem>>, vector<1x128xbf16>
    tpu.vector_store %arg8[%c11_43, %c0_44], %28 {strides = array<i32>} : memref<15x128xbf16, #tpu.memory_space<vmem>>, vector<1x128xbf16>,
    %c0_45 = arith.constant 0 : index
    %c12 = arith.constant 12 : index
    %30 = vector.load %arg7[%c0_45, %c12] : memref<1x256xbf16, #tpu.memory_space<vmem>>, vector<1x128xbf16>
    %c12_46 = arith.constant 12 : index
    %c0_47 = arith.constant 0 : index
    %31 = vector.load %arg8[%c12_46, %c0_47] : memref<15x128xbf16, #tpu.memory_space<vmem>>, vector<1x128xbf16>
    tpu.vector_store %arg8[%c12_46, %c0_47], %30 {strides = array<i32>} : memref<15x128xbf16, #tpu.memory_space<vmem>>, vector<1x128xbf16>,
    %c0_48 = arith.constant 0 : index
    %c13 = arith.constant 13 : index
    %32 = vector.load %arg7[%c0_48, %c13] : memref<1x256xbf16, #tpu.memory_space<vmem>>, vector<1x128xbf16>
    %c13_49 = arith.constant 13 : index
    %c0_50 = arith.constant 0 : index
    %33 = vector.load %arg8[%c13_49, %c0_50] : memref<15x128xbf16, #tpu.memory_space<vmem>>, vector<1x128xbf16>
    tpu.vector_store %arg8[%c13_49, %c0_50], %32 {strides = array<i32>} : memref<15x128xbf16, #tpu.memory_space<vmem>>, vector<1x128xbf16>,
    %c0_51 = arith.constant 0 : index
    %c14 = arith.constant 14 : index
    %34 = vector.load %arg7[%c0_51, %c14] : memref<1x256xbf16, #tpu.memory_space<vmem>>, vector<1x128xbf16>
    %c14_52 = arith.constant 14 : index
    %c0_53 = arith.constant 0 : index
    %35 = vector.load %arg8[%c14_52, %c0_53] : memref<15x128xbf16, #tpu.memory_space<vmem>>, vector<1x128xbf16>
    tpu.vector_store %arg8[%c14_52, %c0_53], %34 {strides = array<i32>} : memref<15x128xbf16, #tpu.memory_space<vmem>>, vector<1x128xbf16>,
    %c0_54 = arith.constant 0 : index
    %c0_55 = arith.constant 0 : index
    %c0_56 = arith.constant 0 : index
    %36 = vector.load %arg4[%c0_54, %c0_55, %c0_56] : memref<1x8x15xbf16, #tpu.memory_space<vmem>>, vector<1x8x15xbf16>
    %37 = vector.shape_cast %36 : vector<1x8x15xbf16> to vector<8x15xbf16>
    %c0_57 = arith.constant 0 : index
    %c0_58 = arith.constant 0 : index
    %38 = vector.load %arg8[%c0_57, %c0_58] : memref<15x128xbf16, #tpu.memory_space<vmem>>, vector<15x128xbf16>
    %cst = arith.constant dense<0.000000e+00> : vector<8x128xf32>
    %39 = tpu.matmul %37, %38, %cst {dimension_numbers = #tpu.dot_dimension_numbers<[1], [0], [0], [1], [0, 0, 1, 1], [], []>} : vector<8x15xbf16>, vector<15x128xbf16>, vector<8x128xf32> -> vector<8x128xf32>
    %c0_59 = arith.constant 0 : index
    %c0_60 = arith.constant 0 : index
    %40 = vector.load %arg5[%c0_59, %c0_60] : memref<8x1xf32, #tpu.memory_space<vmem>>, vector<8x1xf32>
    %41 = vector.broadcast %40 : vector<8x1xf32> to vector<8x128xf32>
    %42 = arith.addf %39, %41 : vector<8x128xf32>
    %cst_61 = arith.constant 0.000000e+00 : f32
    %43 = vector.broadcast %cst_61 : f32 to vector<8x128xf32>
    %44 = arith.cmpf ogt, %42, %43 : vector<8x128xf32>
    %cst_62 = arith.constant 2.000000e-01 : f32
    %45 = vector.broadcast %cst_62 : f32 to vector<8x128xf32>
    %46 = arith.mulf %45, %42 : vector<8x128xf32>
    %47 = arith.select %44, %42, %46 : vector<8x128xi1>, vector<8x128xf32>
    %c0_63 = arith.constant 0 : index
    %c0_64 = arith.constant 0 : index
    %c0_65 = arith.constant 0 : index
    %48 = vector.load %arg6[%c0_63, %c0_64, %c0_65] : memref<1x8x128xf32, #tpu.memory_space<vmem>>, vector<1x8x128xf32>
    %49 = vector.shape_cast %48 : vector<1x8x128xf32> to vector<8x128xf32>
    %50 = vector.shape_cast %47 : vector<8x128xf32> to vector<1x8x128xf32>
    tpu.vector_store %arg6[%c0_63, %c0_64, %c0_65], %50 {strides = array<i32>} : memref<1x8x128xf32, #tpu.memory_space<vmem>>, vector<1x8x128xf32>,
    return
  }
  func.func @transform_0(%arg0: i32, %arg1: i32) -> (i32, i32, i32) {
    %c0_i32 = arith.constant 0 : i32
    %c0_i32_0 = arith.constant 0 : i32
    return %arg0, %c0_i32, %arg1 : i32, i32, i32
  }
  func.func @transform_1(%arg0: i32, %arg1: i32) -> (i32, i32, i32) {
    %c1_i32 = arith.constant 1 : i32
    %0 = arith.addi %arg1, %c1_i32 : i32
    %c0_i32 = arith.constant 0 : i32
    %c0_i32_0 = arith.constant 0 : i32
    return %arg0, %c0_i32, %0 : i32, i32, i32
  }
  func.func @transform_2(%arg0: i32, %arg1: i32) -> (i32, i32, i32) {
    %c0_i32 = arith.constant 0 : i32
    %c0_i32_0 = arith.constant 0 : i32
    %c0_i32_1 = arith.constant 0 : i32
    %c0_i32_2 = arith.constant 0 : i32
    return %c0_i32, %c0_i32_0, %c0_i32_1 : i32, i32, i32
  }
  func.func @transform_3(%arg0: i32, %arg1: i32) -> (i32, i32) {
    %c0_i32 = arith.constant 0 : i32
    %c0_i32_0 = arith.constant 0 : i32
    %c0_i32_1 = arith.constant 0 : i32
    return %c0_i32, %c0_i32_0 : i32, i32
  }
  func.func @transform_4(%arg0: i32, %arg1: i32) -> (i32, i32, i32) {
    %c0_i32 = arith.constant 0 : i32
    %c0_i32_0 = arith.constant 0 : i32
    return %arg0, %c0_i32, %arg1 : i32, i32, i32
  }
}

</mosaic_0001>

<bundles_post_ra>
// kernel: tpu_custom_call.1
= control target key start
LH: loop header
LB: loop body
LE: loop exit
PB: predicated region body
PF: predicated region fallthrough
CT: control target
= control target key end

     0   :  { %9 = vsyncpa [#allocation5], 0  ;;  %s1334_s0 = inlined_call_operand.vmem [shape: bf16[2,1,384], index: 0, kind: input, shape index: {}]   ;;  %s1335_s1 = inlined_call_operand.vmem [shape: bf16[2,1,384], index: 1, kind: input, shape index: {}]   ;;  %s1336_s2 = inlined_call_operand.vmem [shape: bf16[1,8,15], index: 2, kind: input, shape index: {}]   ;;  %s1337_s3 = inlined_call_operand.vmem [shape: f32[8,1], index: 3, kind: input, shape index: {}]   ;;  %s1338_s4 = inlined_call_operand.hbm [shape: f32[2,8,256], index: 4, kind: output, shape index: {}]  }
   0x1   :  { %11 = vsyncpa [#allocation5 + $0x1], 0  ;;  %s1112_s15 = smov 0   ;;  %s1114_s16 = smov 0  }
   0x2   :  { %s1116_s17 = smov 0   ;;  %s1118_s18 = smov 0  }
   0x3   :  { %s1120_s19 = smov 0   ;;  %s1122_s20 = smov 0  }
   0x4   :  { %s1124_s21 = smov 0   ;;  %s1126_s22 = smov 0  }
   0x5 LB: > { %s845_s23 = sadd.s32 4294967295, %s1065_s22   ;;  %s846_s24 = sadd.s32 4294967294, %s1065_s22   ;;  %s1065_s22 = sphi %s1126_s22, %s17_s22   ;;  %s1061_s21 = sphi %s1124_s21, %s1363_s21   ;;  %s1057_s20 = sphi %s1122_s20, %s1362_s20   ;;  %s1053_s19 = sphi %s1120_s19, %s1361_s19   ;;  %s1049_s18 = sphi %s1118_s18, %s1360_s18   ;;  %s1045_s17 = sphi %s1116_s17, %s1359_s17   ;;  %s1041_s16 = sphi %s1114_s16, %s1358_s16   ;;  %s1037_s15 = sphi %s1112_s15, %s1357_s15  }
   0x6   : > { %s26_s25 = sadd.s32 1, %s1057_s20  ;;  %s29_s26 = sadd.s32 1, %s1061_s21 }
   0x7   : > { %p27_p0 = scmp.ge.s32.totalorder %s26_s25, 2  ;;  %p148_p1 = scmp.ne.s32.totalorder %s1045_s17, %s1041_s16 }
   0x8   : > { %p149_p2 = scmp.eq.s32.totalorder %s845_s23, 3  ;;  %p154_p5 = scmp.ne.s32.totalorder %s1041_s16, %s1037_s15 }
   0x9   : > { %s1365_s25 = smov (%p27_p0, %s26_s25), 0  ;;  %s1367_s26 = smov (!%p27_p0, %s29_s26), %s1061_s21 }
   0xa   : > { %s134_s27 = ssub.s32 %s1057_s20, %s1365_s25  ;;  %p1163_p3 = por %p149_p2, %p148_p1 }
   0xb   : > { %p31_p4 = scmp.ge.s32.totalorder %s1367_s26, 2  ;;  %p155_p6 = scmp.eq.s32.totalorder %s846_s24, 3 }
   0xc   : > { %p849_p7 = scmp.ge.s32.totalorder %s1065_s22, 1  ;;  %p201_p9 = scmp.lt.s32.totalorder %s1065_s22, 5 }
   0xd   : > { %s1369_s26 = smov (%p31_p4, %s1367_s26), 0  ;;  %p1172_p8 = por %p155_p6, %p154_p5 }
   0xe   : > { %s133_s30 = ssub.s32 %s1061_s21, %s1369_s26  ;;  %s138_s5 = sadd.s32 1, %s1045_s17 }
   0xf   : > { %s135_s6 = sor.u32 %s134_s27, %s133_s30  ;;  %p202_p10 = pnand %p849_p7, %p201_p9 }
  0x10   : > { %p136_p11 = scmp.eq.s32.totalorder %s135_s6, 0  ;;  %p237_p12 = scmp.lt.s32.totalorder (!%p202_p10), %s1053_s19, 1 }
  0x11   : > { %205 = sbr.rel (%p202_p10) target bundleno = 410 (0x19a), region = 36  ;;  %p239_p13 = scmp.lt.s32.totalorder (!%p202_p10), %s1049_s18, 2 }
  0x12   : > { %s1181_s7 = scalar_select %p136_p11, %s1045_s17, %s138_s5  }
  0x13   : > { %s244_s8 = sadd.s32 (!%p202_p10), 1, %s1049_s18  ;;  %s1068_s6 = smov (!%p202_p10), 120  }
  0x14   : > { %p247_p0 = scmp.lt.s32.totalorder (!%p202_p10), %s244_s8, 2  ;;  %s1074_s13 = smov (!%p202_p10), 122  }
  0x15   : > { %s1075_s14 = smov (!%p202_p10), 124   ;;  %s1079_s27 = smov (!%p202_p10), 117  }
  0x16   : > { %s238_s9 = scalar_select %p237_p12, %s1053_s19, 1  ;;  %vm255_vm0 = vcmask 1040384   ;;  %vm256_vm1 = vsmask.f32 256  ;;  %v258_v1 = vld [vmem:[#allocation2] sm:$0x1]  ;;  %v281_v7 = vlaneseq }
  0x17   : > { %s240_s10 = scalar_select %p239_p13, %s1049_s18, 2  ;;  %vm1189_vm2 = vmand %vm255_vm0, %vm256_vm1  ;;  %v262_v4 = vld [vmem:[#allocation2 + $0x1] sm:$0x1]  ;;  %v1067_v5 = vmov 1935823168   ;;  %v1078_v37 = vmov 0.0  }
  0x18   : > { %s876_s11 = smul.u32 3, %s238_s9  ;;  %s1371_s8 = smov (!%p247_p0, %s244_s8), 2  ;;  %v279_v6 = vunpack.c.l.s4 %v1067_v5  ;;  %v282_v11 = vshrl.u32 %v281_v7, 7  ;;  %v266_v12 = vld [vmem:[#allocation3] sm:$0x1]  ;;  %870 = vmatprep.subr.bf16.mxu0 %v1078_v37  ;;  %vm1083_vm3 = vmmov 0  }
  0x19   : > { %s1070_s9 = smov 116   ;;  %s1080_s30 = smov 119   ;;  %872 = vmatprep.mubr.msk.bf16.mxu0 %vm1083_vm3, %v1078_v37  ;;  %v673_v39 = vld [vmem:[%s1337_s3] sm:$0xff]  ;;  %v1084_v40 = vmov 0   ;;  %vm499_vm4 = vcmask 982016   ;;  %vm322_vm5 = vcmask 1041409  }
  0x1a   : > { %s242_s12 = sadd.s32 %s876_s11, %s240_s10  ;;  %s250_s24 = sadd.s32 %s876_s11, %s1371_s8  ;;  %v280_v10 = vunpack.c.0.s8 %v279_v6  ;;  %967 = vset.pattern.permute.xlu0 %v1084_v40  ;;  %vm323_vm6 = vsmask.f32 1280  ;;  %v502_v42 = vld [vmem:[#allocation3 + $0x4] sm:$0x1]  ;;  %vm319_vm7 = vcmask 1031168   ;;  %vm382_vm8 = vcmask 1042434  }
  0x1b   : > { %s243_s23 = scalar_lea.vmem %s1334_s0, %s242_s12  ;;  %s251_s5 = scalar_lea.vmem %s1335_s1, %s250_s24  ;;  %vm383_vm9 = vsmask.f32 2304  ;;  %vm1209_vm10 = vmand %vm322_vm5, %vm323_vm6  ;;  %v325_v47 = vld [vmem:[#allocation3] sm:$0x2]  ;;  %vm608_vm11 = vcmask 949248   ;;  %vm553_vm13 = vcmask 965632  }
  0x1c   : > { %v254_v2 = vld [vmem:[%s243_s23] sm:$0x1]  ;;  %v283_v14 = vsub.s32 %v280_v10, %v282_v11  ;;  %s1069_s8 = smov 126   ;;  %s1071_s10 = smov 118   ;;  %vm1216_vm12 = vmand %vm382_vm8, %vm383_vm9  ;;  %v611_v53 = vld [vmem:[#allocation3 + $0x4] sm:$0x4] }
  0x1d   : > { %v259_v3 = vsel %vm1189_vm2, %v254_v2, %v258_v1  ;;  %v261_v8 = vld [vmem:[%s251_s5] sm:$0x1]  ;;  %s1072_s11 = smov 125   ;;  %s1073_s12 = smov 127   ;;  %v556_v58 = vld [vmem:[#allocation3 + $0x4] sm:$0x2] }
  0x1e   : > { %260 = vst [vmem:[#allocation2] sm:$0x1] %v259_v3  ;;  %v263_v9 = vsel %vm1189_vm2, %v261_v8, %v262_v4  ;;  %s1076_s23 = smov 121   ;;  %s1077_s24 = smov 123   ;;  %vm294_vm14 = vsmask.f32 7938 }
  0x1f   : > { %264 = vst [vmem:[#allocation2 + $0x1] sm:$0x1] %v263_v9  ;;  %s1081_s5 = smov 114   ;;  %vm354_vm15 = vsmask.f32 7942  ;;  %vm291_vm1 = vcmask 1039360   ;;  %vm1227_vm6 = vmand %vm255_vm0, %vm294_vm14 }
  0x20   : > { %vm444_vm3 = vsmask.f32 3328  ;;  %vm440_vm9 = vcmask 998400   ;;  %v446_v9 = vld [vmem:[#allocation3] sm:$0x8]  ;;  %vm379_vm0 = vcmask 1014784  }
  0x21   : > { %vm414_vm14 = vsmask.f32 7946 }
  0x25   : > { %v265_v13 = vld [vmem:[#allocation2] sm:$0x1] }
  0x26   : > { %v267_v15 = vsel %vm1189_vm2, %v265_v13, %v266_v12  ;;  %v856_v16 = vld.sshfl [vmem:[#allocation2] sm:$0x5 pattern:$0x73625140] }
  0x27   : > { %268 = vst [vmem:[#allocation3] sm:$0x1] %v267_v15  ;;  %v495_v17 = vrot.slane %v856_v16, %v283_v14  ;;  %v308_v18 = vcombine.low %v856_v16, %v856_v16  ;;  %v968_v19 = vld [vmem:[#allocation2] ss:$0 sps:$4 sm:$0x33]  }
  0x28   : > { %v969_v20 = vld [vmem:[#allocation2] ss:$0 sps:$4 sm:$0x33]   ;;  %v597_v22 = vrot.slane %v968_v19, %v283_v14 }
  0x29   : > { %496 = vrot.lane.b32.xlu1 %v495_v17, %s1068_s6  ;;  %v315_v21 = vrot.slane %v308_v18, %v283_v14  ;;  %v345_v23 = vshll.u32 %v495_v17, 16  ;;  %v428_v24 = vrot.slane %v969_v20, %v283_v14  ;;  %v970_v26 = vld [vmem:[#allocation2] ss:$0 sps:$4 sm:$0x33]   ;;  %s1082_s6 = smov 115  }
  0x2a   : > { %v604_v25 = vrot.slane %v597_v22, %v283_v14  ;;  %v368_v29 = vrot.slane %v970_v26, %v283_v14  ;;  %v971_v31 = vld [vmem:[#allocation2] ss:$0 sps:$4 sm:$0x33]   ;;  %v385_v17 = vld [vmem:[#allocation3] sm:$0x4] }
  0x2b   : > { %316 = vrot.lane.b32.xlu0 %v315_v21, %s1069_s8  ;;  %v347_v27 = vrot.slane %v345_v23, 7  ;;  %v429_v28 = vcombine.low %v428_v24, %v428_v24  ;;  %v468_v33 = vrot.slane %v345_v23, 5  ;;  %v652_v34 = vrot.slane %v971_v31, %v283_v14 }
  0x2c   : > { %v375_v32 = vrot.slane %v368_v29, %v283_v14  ;;  %v407_v35 = vrot.slane %v345_v23, 6 }
  0x2d   : > { %605 = vrot.lane.b32.xlu1 %v604_v25, %s1070_s9  ;;  %v436_v30 = vrot.slane %v429_v28, %v283_v14  ;;  %v653_v36 = vcombine.low %v652_v34, %v652_v34  ;;  %s1086_s9 = smov [#allocation4]  }
  0x2e   : > { %v296_v4 = vld [vmem:[#allocation3] sm:$0x1] }
  0x2f   : > { %550 = vrot.lane.b32.xlu0 %v315_v21, %s1071_s10  ;;  %v660_v38 = vrot.slane %v653_v36, %v283_v14  ;;  %s977_s10 = sshll.u32 %s1086_s9, 4  ;;  %s978_s10 = int_to_ptr.vmem [resolvable:$false] %s977_s10 }
  0x31   : > { %348 = vrot.lane.b32.xlu1 %v347_v27, %s1072_s11  ;;  %s979_s11 = scalar_lea.vmem %s978_s10, 256 }
  0x33   : > { %288 = vrot.lane.b32.xlu0 %v345_v23, %s1073_s12  ;;  %s234_s12 = sand.u32 1, %s1041_s16  }
  0x35   : > { %437 = vrot.lane.b32.xlu1 %v436_v30, %s1074_s13  ;;  %s850_s13 = sshll.u32 %s234_s12, 3 }
  0x37   : > { %376 = vrot.lane.b32.xlu0 %v375_v32, %s1075_s14  ;;  %s864_s14 = sshll.u32 %s1053_s19, 1 }
  0x39   : > { %469 = vrot.lane.b32.xlu1 %v468_v33, %s1076_s23  ;;  %s751_s23 = sadd.s32 %s1049_s18, %s864_s14  ;;  %s740_s18 = scalar_lea.sflag [#allocation5], %s234_s12 }
  0x3b   : > { %408 = vrot.lane.b32.xlu0 %v407_v35, %s1077_s24  ;;  %s865_s24 = sshll.u32 %s751_s23, 7 }
  0x3c   : > { %s1282_s8 = scalar_lea.hbm %s1338_s4, %s865_s24 }
  0x3d   : > { %579 = vrot.lane.b32.xlu1 %v347_v27, %s1079_s27  ;;  %s236_s27 = scalar_lea.vmem [#allocation4], %s850_s13 }
  0x3f   : > { %524 = vrot.lane.b32.xlu0 %v345_v23, %s1080_s30  ;;  %s755_s30 = sshll.u32 %s236_s27, 4  ;;  %s1284_s30 = int_to_ptr.vmem [resolvable:$true] %s755_s30 }
  0x40   : > { %s973_s19 = scalar_lea.vmem %s1284_s30, 128  ;;  %p980_p5 = scmp.lt.s32.totalorder %s1284_s30, %s978_s10 }
  0x41   : > { %661 = vrot.lane.b32.xlu1 %v660_v38, %s1081_s5  ;;  %p974_p1 = scmp.ne.s32.totalorder %s1284_s30, %s973_s19  ;;  %p981_p6 = scmp.lt.s32.totalorder %s979_s11, %s973_s19 }
  0x43   : > { %634 = vrot.lane.b32.xlu0 %v407_v35, %s1082_s6  ;;  %p975_p2 = pnand %p974_p1, %p1163_p3  ;;  %p982_p7 = por %p981_p6, %p980_p5 }
  0x45   : > { %p976_p4 = pneg %p975_p2 }
  0x47   : > { %676 = vperm.xlu0 %967, %v673_v39   ;;  %p983_p9 = pnand %p982_p7, %p976_p4 }
  0x9b   : > { %v497_v41 = vpop.permute.xlu1 %496 }
  0x9c   : > { %v498_v43 = vrot.slane %v497_v41, 4 }
  0x9d   : > { %v317_v44 = vpop.permute.xlu0 %316 }
  0x9e   : > { %v500_v45 = vsel %vm499_vm4, %v497_v41, %v498_v43  ;;  %v318_v48 = vrot.slane %v317_v44, 4  ;;  %vm351_vm4 = vcmask 1022976   ;;  %v667_v41 = vld [vmem:[#allocation3 + $0x4] sm:$0x8] }
  0x9f   : > { %v503_v49 = vsel %vm1189_vm2, %v500_v45, %v502_v42  ;;  %v606_v50 = vpop.permute.xlu1 %605  ;;  %vm443_vm2 = vcmask 1043459  }
  0xa0   : > { %504 = vst [vmem:[#allocation3 + $0x4] sm:$0x1] %v503_v49  ;;  %v320_v51 = vsel %vm319_vm7, %v317_v44, %v318_v48  ;;  %v607_v54 = vrot.slane %v606_v50, 4  ;;  %vm1232_vm7 = vmand %vm322_vm5, %vm354_vm15  ;;  %vm475_vm5 = vsmask.f32 7950 }
  0xa1   : > { %v326_v55 = vsel %vm1209_vm10, %v320_v51, %v325_v47  ;;  %v551_v56 = vpop.permute.xlu0 %550  ;;  %vm1250_vm15 = vmand %vm443_vm2, %vm475_vm5 }
  0xa2   : > { %327 = vst [vmem:[#allocation3] sm:$0x2] %v326_v55  ;;  %v609_v57 = vsel %vm608_vm11, %v606_v50, %v607_v54  ;;  %v552_v59 = vrot.slane %v551_v56, 4  ;;  %vm582_vm11 = vcmask 957440   ;;  %v1085_v54 = vmov 65535  }
  0xa3   : > { %v612_v60 = vsel %vm1216_vm12, %v609_v57, %v611_v53  ;;  %v349_v61 = vpop.permute.xlu1 %348 }
  0xa4   : > { %613 = vst [vmem:[#allocation3 + $0x4] sm:$0x4] %v612_v60  ;;  %v554_v62 = vsel %vm553_vm13, %v551_v56, %v552_v59  ;;  %v350_v0 = vrot.slane %v349_v61, 4  ;;  %vm472_vm13 = vcmask 990208   ;;  %v670_v59 = vld [vmem:[%s1336_s2] sm:$0xf] }
  0xa5   : > { %v557_v63 = vsel %vm1209_vm10, %v554_v62, %v556_v58  ;;  %v289_v1 = vpop.permute.xlu0 %288  ;;  %vm1237_vm10 = vmand %vm443_vm2, %vm444_vm3  ;;  %vm411_vm3 = vcmask 1006592   ;;  %vm664_vm2 = vcmask 932864  }
  0xa6   : > { %558 = vst [vmem:[#allocation3 + $0x4] sm:$0x2] %v557_v63  ;;  %v290_v3 = vrot.slane %v289_v1, 4  ;;  %v352_v11 = vsel %vm351_vm4, %v349_v61, %v350_v0  ;;  %vm688_vm4 = vcmask 1046528  }
  0xa7   : > { %v438_v6 = vpop.permute.xlu1 %437  ;;  %v530_v39 = vld [vmem:[#allocation3 + $0x4] sm:$0x1]  ;;  %v690_v55 = vsel %vm688_vm4, 4294967295, %v1085_v54 }
  0xa8   : > { %v292_v7 = vsel %vm291_vm1, %v289_v1, %v290_v3  ;;  %v439_v10 = vrot.slane %v438_v6, 4  ;;  %vm527_vm1 = vcmask 973824  }
  0xa9   : > { %v356_v12 = vld [vmem:[#allocation3] sm:$0x2]  ;;  %v297_v13 = vsel %vm1227_vm6, %v292_v7, %v296_v4  ;;  %v377_v14 = vpop.permute.xlu0 %376 }
  0xaa   : > { %v357_v15 = vsel %vm1232_vm7, %v352_v11, %v356_v12  ;;  %298 = vst [vmem:[#allocation3] sm:$0x1] %v297_v13  ;;  %v441_v16 = vsel %vm440_vm9, %v438_v6, %v439_v10  ;;  %v378_v18 = vrot.slane %v377_v14, 4 }
  0xab   : > { %358 = vst [vmem:[#allocation3] sm:$0x2] %v357_v15  ;;  %v447_v19 = vsel %vm1237_vm10, %v441_v16, %v446_v9  ;;  %v470_v20 = vpop.permute.xlu1 %469  ;;  %v640_v51 = vld [vmem:[#allocation3 + $0x4] sm:$0x4] }
  0xac   : > { %448 = vst [vmem:[#allocation3] sm:$0x8] %v447_v19  ;;  %v380_v21 = vsel %vm379_vm0, %v377_v14, %v378_v18  ;;  %v471_v24 = vrot.slane %v470_v20, 4 }
  0xad   : > { %v386_v22 = vsel %vm1216_vm12, %v380_v21, %v385_v17  ;;  %v409_v23 = vpop.permute.xlu0 %408  ;;  %v585_v31 = vld [vmem:[#allocation3 + $0x4] sm:$0x2]  ;;  %vm1255_vm12 = vmand %vm382_vm8, %vm414_vm14  ;;  %vm637_vm8 = vcmask 941056  }
  0xae   : > { %387 = vst [vmem:[#allocation3] sm:$0x4] %v386_v22  ;;  %v410_v28 = vrot.slane %v409_v23, 4  ;;  %v473_v34 = vsel %vm472_vm13, %v470_v20, %v471_v24 }
  0xaf   : > { %v580_v25 = vpop.permute.xlu1 %579 }
  0xb0   : > { %v581_v26 = vrot.slane %v580_v25, 4  ;;  %v412_v44 = vsel %vm411_vm3, %v409_v23, %v410_v28 }
  0xb1   : > { %v525_v29 = vpop.permute.xlu0 %524 }
  0xb2   : > { %v583_v30 = vsel %vm582_vm11, %v580_v25, %v581_v26  ;;  %v526_v32 = vrot.slane %v525_v29, 4 }
  0xb3   : > { %v477_v33 = vld [vmem:[#allocation3] sm:$0x8]  ;;  %v586_v36 = vsel %vm1232_vm7, %v583_v30, %v585_v31  ;;  %v662_v37 = vpop.permute.xlu1 %661  ;;  %vm684_vm7 = vcmask 121856  }
  0xb4   : > { %v478_v38 = vsel %vm1250_vm15, %v473_v34, %v477_v33  ;;  %587 = vst [vmem:[#allocation3 + $0x4] sm:$0x2] %v586_v36  ;;  %v528_v40 = vsel %vm527_vm1, %v525_v29, %v526_v32  ;;  %v663_v42 = vrot.slane %v662_v37, 4 }
  0xb5   : > { %479 = vst [vmem:[#allocation3] sm:$0x8] %v478_v38  ;;  %v416_v43 = vld [vmem:[#allocation3] sm:$0x4]  ;;  %v531_v45 = vsel %vm1227_vm6, %v528_v40, %v530_v39  ;;  %v635_v46 = vpop.permute.xlu0 %634  ;;  %vm689_vm6 = vcmask 1047552  }
  0xb6   : > { %v417_v47 = vsel %vm1255_vm12, %v412_v44, %v416_v43  ;;  %532 = vst [vmem:[#allocation3 + $0x4] sm:$0x1] %v531_v45  ;;  %v665_v48 = vsel %vm664_vm2, %v662_v37, %v663_v42  ;;  %v636_v49 = vrot.slane %v635_v46, 4  ;;  %v691_v56 = vsel %vm689_vm6, %v690_v55, 0 }
  0xb7   : > { %418 = vst [vmem:[#allocation3] sm:$0x4] %v417_v47  ;;  %v668_v50 = vsel %vm1237_vm10, %v665_v48, %v667_v41 }
  0xb8   : > { %669 = vst [vmem:[#allocation3 + $0x4] sm:$0x8] %v668_v50  ;;  %v638_v52 = vsel %vm637_vm8, %v635_v46, %v636_v49 }
  0xb9   : > { %v641_v53 = vsel %vm1255_vm12, %v638_v52, %v640_v51 }
  0xba   : > { %642 = vst [vmem:[#allocation3 + $0x4] sm:$0x4] %v641_v53 }
  0xc1   : > { %v972_v57 = vld [vmem:[#allocation3] sm:$0xff]  }
  0xc2   : > { %v693_v58 = vand.u32 %v972_v57, %v691_v56  ;;  %v677_v60 = vpop.permute.xlu0 %676 }
  0xc4   : > { %871 = vmatpush3.bf16.msra.mxu0 %v693_v58 }
  0xc7   : > { %873 = vmatmul.mubr.msk.bf16.vlgmr.msra.gmra.mxu0 %vm684_vm7, %v670_v59 }
 0x187   : > { %v729_v61 = vpop.f32.mrf.mxu0 }
 0x188   : > { %v730_v62 = vadd.f32 %v729_v61, %v677_v60 }
 0x189   : > { %v874_v63 = vpop.f32.mrf.mxu0 }
 0x18a   : > { %vm735_vm9 = vcmp.gt.f32.partialorder %v730_v62, 0.0  ;;  %v736_v0 = vmul.f32 0.2, %v730_v62 }
 0x18b   : > { %v732_v1 = vpop.f32.mrf.mxu0 }
 0x18c   : > { %v737_v2 = vsel %vm735_vm9, %v730_v62, %v736_v0 }
 0x18d   : > { %v875_v3 = vpop.f32.mrf.mxu0  ;;  %738 = vst [vmem:[%s236_s27] sm:$0xff] %v737_v2 }
 0x18e   : > { %986 = shalt.err (!%p983_p9)
}
 0x18f   : > { %s987_s13 = scalar_lea.hbm %s1282_s8, 128  ;;  %s991_s23 = scalar_lea.hbm %s1338_s4, 512 }
 0x190   : > { %p988_p10 = scmp.ne.s32.totalorder %s1282_s8, %s987_s13  ;;  %p992_p13 = scmp.lt.s32.totalorder %s1282_s8, %s1338_s4 }
 0x191   : > { %p993_p0 = scmp.lt.s32.totalorder %s991_s23, %s987_s13 }
 0x192   : > { %p989_p11 = pnand %p988_p10, %p1163_p3 }
 0x193   : > { %p994_p1 = por %p993_p0, %p992_p13 }
 0x194   : > { %p990_p12 = pneg %p989_p11 }
 0x196   : > { %p995_p2 = pnand %p994_p1, %p990_p12 }
 0x198   : > { %998 = shalt.err (!%p995_p2)
}
 0x199   : > { %877 = dma.vmem_to_hbm [thread:$0]  (%p1163_p3), %s1284_s30, 128, %s1282_s8, %s740_s18  }
 0x19a PF: > { %p883_p4 = scmp.ge.s32.totalorder %s1065_s22, 2  ;;  %s767_s5 = sand.u32 1, %s1037_s15  }
 0x19b   : > { %s768_s6 = scalar_lea.sflag [#allocation5], %s767_s5 }
 0x19c   : > { %p880_p5 = pnand %p883_p4, %p1172_p8 }
 0x19e   : > { %p881_p6 = pneg %p880_p5 }
 0x1a0   : > { %1032 = dma.done.wait (%p881_p6), %s768_s6, 128  }
 0x1a1   : > { %1034 = vsyncadd (%p881_p6), %s768_s6, 4294967168  ;;  %s17_s22 = sadd.s32 1, %s1065_s22   ;;  %s1357_s15 = smov %s1041_s16 }
 0x1a2   : > { %p14_p7 = scmp.ge.s32.totalorder %s17_s22, 6   ;;  %s1358_s16 = smov %s1045_s17 }
 0x1a3   : > { %s1359_s17 = smov %s1181_s7  ;;  %s1360_s18 = smov %s1057_s20 }
 0x1a4   : > { %s1361_s19 = smov %s1061_s21  ;;  %s1362_s20 = smov %s1365_s25 }
 0x1a5   : > { %s1363_s21 = smov %s1369_s26  ;;  %16 = sbr.rel (!%p14_p7) target bundleno = 5 (0x5), region = 74 }
 0x1aa   :  { %773 = vsyncpa [#allocation5], 1 }
 0x1ab   :  { %775 = vsyncpa [#allocation5 + $0x1], 1 }

</bundles_post_ra>
